<compile_context>
chip_gen: v5e
topology: v5e:2x2
jax: 0.10.0
libtpu: 0.0.40
codegen_flags: <defaults>
</compile_context>

<pallas_src>
import math

import jax
import jax.numpy as jnp
from jax.experimental import pallas as pl
from jax.experimental.pallas import tpu as pltpu


def _layer_scale_kernel(x_ref, gamma_ref, o_ref):
    # x_ref: (tile_rows, W), gamma_ref: (1, W) f32 -> broadcast VPU multiply.
    o_ref[...] = (x_ref[...].astype(jnp.float32) * gamma_ref[...]).astype(o_ref.dtype)


def _sublane_multiple(dtype):
    itemsize = jnp.dtype(dtype).itemsize
    return {4: 8, 2: 16, 1: 32}.get(itemsize, 8)


def _round_up(a, b):
    return ((a + b - 1) // b) * b


def _block_budget():
    """Generation-aware (target_block_bytes, vmem_limit_bytes)."""
    vmem = None
    try:
        info = pltpu.get_tpu_info()
        vmem = getattr(info, "vmem_capacity_bytes", None)
    except Exception:
        vmem = None
    if vmem is None:
        # Conservative fallback: safe under every generation's scoped default.
        return 1 << 20, 16 << 20
    if vmem >= (96 << 20):
        # v5e / v6e: 128 MiB physical VMEM. 4 MiB blocks; 4 double-buffered
        # tiles (in + out) = 16 MiB, explicit 32 MiB scoped limit gives 2x headroom.
        return 4 << 20, 32 << 20
    # v7x: 64 MiB physical per TensorCore. 2 MiB blocks -> 8 MiB pipelined,
    # 24 MiB scoped limit stays well inside the physical ceiling.
    return 2 << 20, 24 << 20


def layer_scale(x, gamma, *, target_block_bytes=None, donate_x=False):
    """out = x * gamma with gamma of shape (D,) broadcast over leading dims of x."""
    orig_shape = x.shape
    D = orig_shape[-1]
    assert gamma.shape == (D,), "gamma must have shape (dim,)"
    assert jnp.issubdtype(x.dtype, jnp.floating), "x must be a floating dtype"

    if target_block_bytes is None:
        target_block_bytes, vmem_limit_bytes = _block_budget()
    else:
        vmem_limit_bytes = max(16 << 20, 8 * target_block_bytes)

    # Flatten all leading dims into a row axis.
    R = 1
    for s in orig_shape[:-1]:
        R *= s

    # Lane-dense repack: fold k consecutive channel-rows into one lane-row so
    # the last dim is a multiple of 128 (unmasked full-width vector stores).
    # gamma's broadcast simply repeats k times along the widened row.
    k = 128 // math.gcd(D, 128)
    R_pad = _round_up(max(R, 1), k)
    x_flat = x.reshape(R, D)
    if R_pad != R:
        # Pad a handful of rows (< k) rather than dropping to masked narrow
        # (W = D) stores for the entire tensor.
        x_flat = jnp.pad(x_flat, ((0, R_pad - R), (0, 0)))
    W = k * D
    Rp = R_pad // k
    x2 = x_flat.reshape(Rp, W)
    gamma_row = jnp.tile(gamma.astype(jnp.float32), k).reshape(1, W)

    # Block sizing: sublane-aligned rows, ~target_block_bytes per block, and at
    # least 2 blocks whenever possible so both TensorCores on v7x get work.
    sub = _sublane_multiple(x.dtype)
    bytes_per_row = W * jnp.dtype(x.dtype).itemsize
    rows_per_block = max(sub, (target_block_bytes // bytes_per_row) // sub * sub)
    if Rp >= 2 * sub:
        half_rows = _round_up(pl.cdiv(Rp, 2), sub)
        rows_per_block = min(rows_per_block, half_rows)
    if Rp <= rows_per_block:
        tile_rows = Rp  # full extent -> always a legal block shape
    else:
        tile_rows = rows_per_block

    grid = (pl.cdiv(Rp, tile_rows),)

    out = pl.pallas_call(
        _layer_scale_kernel,
        out_shape=jax.ShapeDtypeStruct((Rp, W), x.dtype),
        grid_spec=pltpu.PrefetchScalarGridSpec(
            num_scalar_prefetch=0,
            grid=grid,
            in_specs=[
                pl.BlockSpec((tile_rows, W), lambda i: (i, 0)),
                pl.BlockSpec((1, W), lambda i: (0, 0)),
            ],
            out_specs=pl.BlockSpec((tile_rows, W), lambda i: (i, 0)),
        ),
        compiler_params=pltpu.CompilerParams(
            dimension_semantics=("parallel",),
            vmem_limit_bytes=vmem_limit_bytes,
        ),
        input_output_aliases={0: 0} if donate_x else {},
    )(x2, gamma_row)

    out = out.reshape(R_pad, D)
    if R_pad != R:
        out = out[:R]
    return out.reshape(orig_shape)


if __name__ == "__main__":
    # Module params: dim=32, init_values=1e-5  ->  gamma = 1e-5 * ones(32)
    B, N, D = 2, 8, 32
    init_values = 1e-5

    key = jax.random.PRNGKey(0)
    x = jax.random.normal(key, (B, N, D), dtype=jnp.float32)
    gamma = init_values * jnp.ones((D,), dtype=jnp.float32)

    out = layer_scale(x, gamma)
    out = jax.block_until_ready(out)

    # Reference check (plain JAX broadcast multiply).
    ref = x * gamma
    assert out.shape == x.shape
    assert jnp.allclose(out, ref, atol=1e-7, rtol=1e-6), "mismatch vs reference"

    print("KERNEL_OK")
</pallas_src>

<mosaic_0001>
module attributes {stable_mosaic.version = 11 : i64} {
  func.func @_layer_scale_kernel(%arg0: i32, %arg1: memref<4x128xf32, #tpu.memory_space<vmem>>, %arg2: memref<1x128xf32, #tpu.memory_space<vmem>>, %arg3: memref<4x128xf32, #tpu.memory_space<vmem>>) attributes {dimension_semantics = [#tpu.dimension_semantics<parallel>], iteration_bounds = array<i64: 1>, scalar_prefetch = 0 : i64, scratch_operands = 0 : i64, tpu.core_type = #tpu.core_type<tc>, window_params = [{transform_indices = @transform_0, window_bounds = array<i64: 4, 128>}, {pipeline_mode = #tpu.pipeline_mode<synchronous>, transform_indices = @transform_1, window_bounds = array<i64: 1, 128>}, {transform_indices = @transform_2, window_bounds = array<i64: 4, 128>}]} {
    %c0 = arith.constant 0 : index
    %c0_0 = arith.constant 0 : index
    %0 = vector.load %arg1[%c0, %c0_0] : memref<4x128xf32, #tpu.memory_space<vmem>>, vector<4x128xf32>
    %c0_1 = arith.constant 0 : index
    %c0_2 = arith.constant 0 : index
    %1 = vector.load %arg2[%c0_1, %c0_2] : memref<1x128xf32, #tpu.memory_space<vmem>>, vector<1x128xf32>
    %2 = vector.broadcast %1 : vector<1x128xf32> to vector<4x128xf32>
    %3 = arith.mulf %0, %2 : vector<4x128xf32>
    %c0_3 = arith.constant 0 : index
    %c0_4 = arith.constant 0 : index
    %4 = vector.load %arg3[%c0_3, %c0_4] : memref<4x128xf32, #tpu.memory_space<vmem>>, vector<4x128xf32>
    tpu.vector_store %arg3[%c0_3, %c0_4], %3 {strides = array<i32>} : memref<4x128xf32, #tpu.memory_space<vmem>>, vector<4x128xf32>,
    return
  }
  func.func @transform_0(%arg0: i32) -> (i32, i32) {
    %c0_i32 = arith.constant 0 : i32
    %c0_i32_0 = arith.constant 0 : i32
    return %arg0, %c0_i32 : i32, i32
  }
  func.func @transform_1(%arg0: i32) -> (i32, i32) {
    %c0_i32 = arith.constant 0 : i32
    %c0_i32_0 = arith.constant 0 : i32
    %c0_i32_1 = arith.constant 0 : i32
    return %c0_i32, %c0_i32_0 : i32, i32
  }
  func.func @transform_2(%arg0: i32) -> (i32, i32) {
    %c0_i32 = arith.constant 0 : i32
    %c0_i32_0 = arith.constant 0 : i32
    return %arg0, %c0_i32 : i32, i32
  }
}

</mosaic_0001>

<bundles_post_ra>
// kernel: tpu_custom_call.1
= control target key start
LH: loop header
LB: loop body
LE: loop exit
PB: predicated region body
PF: predicated region fallthrough
CT: control target
= control target key end

     0   :  { %7 = vsyncpa [#allocation3], 0  ;;  %s174_s0 = inlined_call_operand.hbm [shape: f32[4,128], index: 0, kind: input, shape index: {}]   ;;  %s175_s1 = inlined_call_operand.hbm [shape: f32[1,128], index: 1, kind: input, shape index: {}]   ;;  %s176_s2 = inlined_call_operand.hbm [shape: f32[4,128], index: 2, kind: output, shape index: {}]  }
   0x1   :  { %8 = vsyncpa [#allocation6], 0 }
   0x2   :  { %9 = vsyncpa [#allocation4], 0  ;;  %s15_s11 = sshll.u32 %s174_s0, 4  ;;  %s147_s12 = smov [#allocation2]   ;;  %s16_s11 = int_to_ptr.hbm [resolvable:$true] %s15_s11 }
   0x3   :  { %s17_s13 = sshll.u32 %s147_s12, 4  ;;  %s26_s16 = sshll.u32 %s175_s1, 4  ;;  %s18_s13 = int_to_ptr.vmem [resolvable:$true] %s17_s13  ;;  %s27_s16 = int_to_ptr.hbm [resolvable:$true] %s26_s16 }
   0x4   :  { %20 = dma.hbm_to_vmem [thread:$0]  %s16_s11, 64, %s18_s13, [#allocation3]  }
   0x5   :  { %s148_s17 = smov [#allocation5]  }
   0x6   :  { %s28_s18 = sshll.u32 %s148_s17, 4  ;;  %s29_s18 = int_to_ptr.vmem [resolvable:$true] %s28_s18 }
   0x7   :  { %31 = dma.hbm_to_vmem [thread:$0]  %s27_s16, 16, %s29_s18, [#allocation6]  }
   0x8   :  { %141 = dma.done.wait [#allocation3], 64  }
   0x9   :  { %142 = vsyncadd [#allocation3], 4294967232 }
   0xa   :  { %143 = dma.done.wait [#allocation6], 16  }
   0xb   :  { %144 = vsyncadd [#allocation6], 4294967280  ;;  %s149_s19 = smov [#allocation7]   ;;  %s54_s22 = sshll.u32 %s176_s2, 4  ;;  %v40_v0 = vld [vmem:[#allocation2] sm:$0xf]  ;;  %s55_s22 = int_to_ptr.hbm [resolvable:$true] %s54_s22 }
   0xc   :  { %s52_s0 = sshll.u32 %s149_s19, 4  ;;  %v68_v1 = vld [vmem:[#allocation5] ss:$0 sm:$0xff]  ;;  %s53_s0 = int_to_ptr.vmem [resolvable:$true] %s52_s0 }
   0xd   :  { %v45_v2 = vmul.f32 %v68_v1, %v40_v0 }
   0xf   :  { %46 = vst [vmem:[#allocation7] sm:$0xf] %v45_v2 }
  0x10   :  { %57 = dma.vmem_to_hbm [thread:$0]  %s53_s0, 64, %s55_s22, [#allocation4]  }
  0x11   :  { %145 = dma.done.wait [#allocation4], 64  }
  0x12   :  { %146 = vsyncadd [#allocation4], 4294967232 }
  0x13   :  { %62 = vsyncpa [#allocation3], 1 }
  0x14   :  { %63 = vsyncpa [#allocation6], 1 }
  0x15   :  { %64 = vsyncpa [#allocation4], 1 }

</bundles_post_ra>
